<compile_context>
chip_gen: v7x
topology: tpu7x:2x2x1
jax: 0.10.0
libtpu: 0.0.40
codegen_flags: <defaults>
</compile_context>

<pallas_src>
import jax
import jax.numpy as jnp
from jax.experimental import pallas as pl
from jax.experimental.pallas import tpu as pltpu


# Widest-first lane candidates; wider last dim => fewer, denser DMAs/stores.
_LANE_CANDIDATES = (4096, 2048, 1024, 512, 256, 128)


def _default_block_bytes():
    """Per-block byte target, chip-aware so in+out double-buffering fits the
    default scoped-VMEM limit (v5e: 16 MiB, v6e/v7x: 32 MiB)."""
    try:
        kind = jax.devices()[0].device_kind.lower()
    except Exception:
        kind = ""
    if ("v6" in kind) or ("v7" in kind) or ("tpu7" in kind):
        return 4 * 1024 * 1024   # 4 MiB blocks -> ~16 MiB scoped VMEM in flight
    return 2 * 1024 * 1024       # v5e / unknown: safe everywhere


def leaky_relu_pallas(x, negative_slope=0.1, *, target_block_bytes=None, donate=False):
    """Elementwise LeakyReLU via a Pallas TPU kernel.

    x: any-shape floating array (e.g. NCHW). Returns array of same shape/dtype.
    """
    orig_shape = x.shape
    dtype = x.dtype
    n = x.size
    if n == 0:
        return x

    slope = float(negative_slope)  # compile-time constant baked into the kernel

    def kernel(x_ref, o_ref):
        v = x_ref[...]
        o_ref[...] = jnp.where(v > 0, v, v * slope).astype(o_ref.dtype)

    if target_block_bytes is None:
        target_block_bytes = _default_block_bytes()
    itemsize = jnp.dtype(dtype).itemsize
    # Sublane packing multiple: 8 for 4-byte, 16 for bf16, 32 for 1-byte dtypes.
    sub = max(8, 32 // itemsize)

    # Minor: let XLA reuse the input HBM buffer for the output when the caller
    # has donated it; off by default to avoid a defensive copy otherwise.
    alias_kwargs = {"input_output_aliases": {0: 0}} if donate else {}
    cparams = pltpu.CompilerParams(dimension_semantics=("parallel",))

    x_flat = x.reshape(-1)  # contiguous row-major reshape: no copy

    lanes = None
    for cand in _LANE_CANDIDATES:
        if n % cand == 0:
            lanes = cand
            break

    if lanes is None:
        # ---- Ragged path: present as (1, n); Pallas masks the tail writes.
        # No physical pad, no slice-back.  A (1, N) block occupies 8x its data
        # size in VMEM (sublane padding), so budget block elements accordingly.
        max_block_elems = max(128, (target_block_bytes // (8 * itemsize)) // 128 * 128)
        if n <= max_block_elems:
            block_n = n                      # full-extent block (legal: equals array dim)
        else:
            block_n = max_block_elems        # 128-multiple; last block masked by Pallas
        grid = (pl.cdiv(n, block_n),)

        x2d = x_flat.reshape(1, n)
        out2d = pl.pallas_call(
            kernel,
            out_shape=jax.ShapeDtypeStruct((1, n), dtype),
            grid=grid,
            in_specs=[pl.BlockSpec((1, block_n), lambda i: (0, i))],
            out_specs=pl.BlockSpec((1, block_n), lambda i: (0, i)),
            compiler_params=cparams,
            **alias_kwargs,
        )(x2d)
        return out2d.reshape(orig_shape)

    # ---- Common path: lane-dense 2-D slab, zero-copy reshape.
    rows = n // lanes
    x2d = x_flat.reshape(rows, lanes)

    row_bytes = lanes * itemsize
    target_rows = max(sub, target_block_bytes // row_bytes)

    if target_rows >= rows:
        num_blocks = 1
    else:
        num_blocks = pl.cdiv(rows, target_rows)
    # v7x megacore: guarantee >= 2 grid steps for mid-size inputs so the
    # "parallel" axis actually spreads across both TensorCores.
    if num_blocks == 1 and rows >= 2 * sub and n * itemsize >= (1 << 20):
        num_blocks = 2

    if num_blocks == 1:
        tile_rows = rows                              # full extent (always legal)
    else:
        tile_rows = pl.cdiv(rows, num_blocks)         # split as evenly as possible
        tile_rows = pl.cdiv(tile_rows, sub) * sub     # align to sublane packing
        tile_rows = min(tile_rows, rows)
    grid = (pl.cdiv(rows, tile_rows),)

    out2d = pl.pallas_call(
        kernel,
        out_shape=jax.ShapeDtypeStruct((rows, lanes), dtype),
        grid=grid,
        in_specs=[pl.BlockSpec((tile_rows, lanes), lambda i: (i, 0))],
        out_specs=pl.BlockSpec((tile_rows, lanes), lambda i: (i, 0)),
        compiler_params=cparams,
        **alias_kwargs,
    )(x2d)

    return out2d.reshape(orig_shape)


if __name__ == "__main__":
    key = jax.random.PRNGKey(0)
    x = jax.random.normal(key, (2, 4, 16, 16), dtype=jnp.float32)  # NCHW

    y = leaky_relu_pallas(x, negative_slope=0.1)
    y = jax.block_until_ready(y)

    # Reference check (elementwise leaky-ReLU; the PyTorch module's scalar
    # `if x > 0` generalizes to this for tensor inputs).
    y_ref = jnp.where(x > 0, x, x * 0.1)
    assert y.shape == x.shape and y.dtype == x.dtype
    assert jnp.allclose(y, y_ref, atol=1e-6), "mismatch vs reference (bulk path)"

    # Exercise the ragged (n % 128 != 0) masked-tail path too.
    x_r = jax.random.normal(jax.random.PRNGKey(1), (3, 5, 7), dtype=jnp.float32)
    y_r = jax.block_until_ready(leaky_relu_pallas(x_r, negative_slope=0.1))
    assert jnp.allclose(y_r, jnp.where(x_r > 0, x_r, x_r * 0.1), atol=1e-6), \
        "mismatch vs reference (ragged path)"

    print("KERNEL_OK")
</pallas_src>

<mosaic_0001>
module attributes {stable_mosaic.version = 11 : i64} {
  func.func @kernel(%arg0: i32, %arg1: memref<1x2048xf32, #tpu.memory_space<vmem>>, %arg2: memref<1x2048xf32, #tpu.memory_space<vmem>>) attributes {dimension_semantics = [#tpu.dimension_semantics<parallel>], iteration_bounds = array<i64: 1>, scalar_prefetch = 0 : i64, scratch_operands = 0 : i64, tpu.core_type = #tpu.core_type<tc>, window_params = [{transform_indices = @transform_0, window_bounds = array<i64: 1, 2048>}, {transform_indices = @transform_1, window_bounds = array<i64: 1, 2048>}]} {
    %c0 = arith.constant 0 : index
    %c0_0 = arith.constant 0 : index
    %0 = vector.load %arg1[%c0, %c0_0] : memref<1x2048xf32, #tpu.memory_space<vmem>>, vector<1x2048xf32>
    %cst = arith.constant 0.000000e+00 : f32
    %1 = vector.broadcast %cst : f32 to vector<1x2048xf32>
    %2 = arith.cmpf ogt, %0, %1 : vector<1x2048xf32>
    %cst_1 = arith.constant 1.000000e-01 : f32
    %3 = vector.broadcast %cst_1 : f32 to vector<1x2048xf32>
    %4 = arith.mulf %0, %3 : vector<1x2048xf32>
    %5 = arith.select %2, %0, %4 : vector<1x2048xi1>, vector<1x2048xf32>
    %c0_2 = arith.constant 0 : index
    %c0_3 = arith.constant 0 : index
    %6 = vector.load %arg2[%c0_2, %c0_3] : memref<1x2048xf32, #tpu.memory_space<vmem>>, vector<1x2048xf32>
    tpu.vector_store %arg2[%c0_2, %c0_3], %5 {strides = array<i32>} : memref<1x2048xf32, #tpu.memory_space<vmem>>, vector<1x2048xf32>,
    return
  }
  func.func @transform_0(%arg0: i32) -> (i32, i32) {
    %c0_i32 = arith.constant 0 : i32
    %c0_i32_0 = arith.constant 0 : i32
    return %arg0, %c0_i32 : i32, i32
  }
  func.func @transform_1(%arg0: i32) -> (i32, i32) {
    %c0_i32 = arith.constant 0 : i32
    %c0_i32_0 = arith.constant 0 : i32
    return %arg0, %c0_i32 : i32, i32
  }
}

</mosaic_0001>

<bundles_post_ra>
// kernel: tpu_custom_call.1
= control target key start
LH: loop header
LB: loop body
LE: loop exit
PB: predicated region body
PF: predicated region fallthrough
CT: control target
= control target key end

     0   :  { %6 = vsyncpa [#allocation3], 0  ;;  %s132_s0 = inlined_call_operand.hbm [shape: f32[1,2048], index: 0, kind: input, shape index: {}]   ;;  %s133_s1 = inlined_call_operand.hbm [shape: f32[1,2048], index: 1, kind: output, shape index: {}]  }
   0x1   :  { %7 = vsyncpa [#allocation4], 0  ;;  %s96_s6 = smov [#allocation2]   ;;  %s48_s10 = scalar_lea.hbm %s132_s0, 256 }
   0x2   :  { %s14_s7 = sshll.u32 %s96_s6, 4  ;;  %p49_p0 = scmp.ne.s32.totalorder %s132_s0, %s48_s10  ;;  %s15_s7 = int_to_ptr.vmem [resolvable:$true] %s14_s7 }
   0x3   :  { %p52_p1 = scmp.lt.u32.totalorder %s48_s10, %s132_s0 }
   0x5   :  { %p54_p2 = pnand %p52_p1, %p49_p0 }
   0x7   :  { %57 = shalt.err (!%p54_p2)
}
   0x8   :  { %s58_s15 = scalar_lea.vmem %s15_s7, 256  ;;  %p63_p4 = scmp.lt.s32.totalorder %s15_s7, %s15_s7 }
   0x9   :  { %p59_p3 = scmp.ne.s32.totalorder %s15_s7, %s58_s15  ;;  %p64_p5 = scmp.lt.s32.totalorder %s58_s15, %s58_s15 }
   0xb   :  { %p65_p6 = por %p64_p5, %p63_p4 }
   0xd   :  { %p66_p7 = pnand %p65_p6, %p59_p3 }
   0xf   :  { %69 = shalt.err (!%p66_p7)
}
  0x10   :  { %17 = dma.hbm_to_vmem [thread:$0]  %s132_s0, 256, %s15_s7, [#allocation3]  }
  0x11   :  { %92 = dma.done.wait [#allocation3], 256  }
  0x12   :  { %93 = vsyncadd [#allocation3], 4294967040  ;;  %s97_s18 = smov [#allocation5]   ;;  %v21_v0 = vld [vmem:[#allocation2] sm:$0xff]  ;;  %v22_v1 = vld [vmem:[#allocation2 + $0x8] sm:$0xff] }
  0x13   :  { %s37_s19 = sshll.u32 %s97_s18, 4  ;;  %vm23_vm0 = vcmp.gt.f32.partialorder %v21_v0, 0.0  ;;  %v25_v2 = vmul.f32 0.1, %v21_v0  ;;  %vm24_vm1 = vcmp.gt.f32.partialorder %v22_v1, 0.0  ;;  %s38_s19 = int_to_ptr.vmem [resolvable:$true] %s37_s19 }
  0x14   :  { %v26_v3 = vmul.f32 0.1, %v22_v1  ;;  %s70_s20 = scalar_lea.vmem %s38_s19, 256  ;;  %p75_p9 = scmp.lt.s32.totalorder %s38_s19, %s38_s19 }
  0x15   :  { %v27_v4 = vsel %vm23_vm0, %v21_v0, %v25_v2  ;;  %p71_p8 = scmp.ne.s32.totalorder %s38_s19, %s70_s20  ;;  %p76_p10 = scmp.lt.s32.totalorder %s70_s20, %s70_s20 }
  0x16   :  { %v28_v5 = vsel %vm24_vm1, %v22_v1, %v26_v3  ;;  %29 = vst [vmem:[#allocation5] sm:$0xff] %v27_v4 }
  0x17   :  { %30 = vst [vmem:[#allocation5 + $0x8] sm:$0xff] %v28_v5  ;;  %p77_p11 = por %p76_p10, %p75_p9 }
  0x19   :  { %p78_p12 = pnand %p77_p11, %p71_p8 }
  0x1b   :  { %81 = shalt.err (!%p78_p12)
}
  0x1c   :  { %s82_s22 = scalar_lea.hbm %s133_s1, 256 }
  0x1d   :  { %p83_p13 = scmp.ne.s32.totalorder %s133_s1, %s82_s22  ;;  %p86_p0 = scmp.lt.u32.totalorder %s82_s22, %s133_s1 }
  0x1f   :  { %p88_p1 = pnand %p86_p0, %p83_p13 }
  0x21   :  { %91 = shalt.err (!%p88_p1)
}
  0x22   :  { %40 = dma.vmem_to_hbm [thread:$0]  %s38_s19, 256, %s133_s1, [#allocation4]  }
  0x23   :  { %94 = dma.done.wait [#allocation4], 256  }
  0x24   :  { %95 = vsyncadd [#allocation4], 4294967040 }
  0x25   :  { %44 = vsyncpa [#allocation3], 1 }
  0x26   :  { %45 = vsyncpa [#allocation4], 1 }

</bundles_post_ra>
